<compile_context>
chip_gen: v7x
topology: tpu7x:2x2x1
jax: 0.10.0
libtpu: 0.0.40
codegen_flags: <defaults>
</compile_context>

<pallas_src>
import functools

import jax
import jax.numpy as jnp
from jax import lax
from jax.experimental import pallas as pl
from jax.experimental.pallas import tpu as pltpu


# ---------------------------------------------------------------------------
# Fused kernel: qkv projection + per-head attention + output projection
# ---------------------------------------------------------------------------

def _fused_attention_kernel(x_ref, wq_ref, wk_ref, wv_ref, wout_ref, bout_ref,
                            o_ref, *, b_tile, heads, dim_head, compute_dtype):
    # x_ref:    (b_tile, N, dim)
    # wq/wk/wv: (dim, inner)            resident weights (scale folded into wq)
    # wout_ref: (heads, dim_head, dim_out)
    # bout_ref: (1, dim_out)
    # o_ref:    (b_tile, N, dim_out)
    n = x_ref.shape[1]
    dim = x_ref.shape[2]
    dim_out = o_ref.shape[2]
    inner = heads * dim_head
    m = b_tile * n

    # Flatten (b_tile, N, dim) -> (M, dim): fat projection matmuls, one per step.
    x = x_ref[...].reshape(m, dim)
    if compute_dtype is not None:
        x = x.astype(compute_dtype)

    q = jnp.dot(x, wq_ref[...], preferred_element_type=jnp.float32)  # (M, inner)
    k = jnp.dot(x, wk_ref[...], preferred_element_type=jnp.float32)
    v = jnp.dot(x, wv_ref[...], preferred_element_type=jnp.float32)
    if compute_dtype is not None:
        q = q.astype(compute_dtype)
        k = k.astype(compute_dtype)
        v = v.astype(compute_dtype)
    q = q.reshape(b_tile, n, inner)
    k = k.reshape(b_tile, n, inner)
    v = v.reshape(b_tile, n, inner)

    # Accumulator starts at the broadcast bias (hoisted, done once); each head
    # adds its own slice of the output projection -> no concat, no attn_out.
    y = jnp.broadcast_to(bout_ref[...].astype(jnp.float32), (m, dim_out))

    for h in range(heads):
        sl = slice(h * dim_head, (h + 1) * dim_head)
        qh = q[:, :, sl]                          # (b_tile, N, d)
        kh = k[:, :, sl]
        vh = v[:, :, sl]

        # Batched QK^T contracting the last dims natively -- no k transpose.
        dots = lax.dot_general(qh, kh, (((2,), (2,)), ((0,), (0,))),
                               preferred_element_type=jnp.float32)  # (b_tile,N,N)

        # Numerically stable softmax with deferred normalization.
        dots = dots - jnp.max(dots, axis=-1, keepdims=True)
        e = jnp.exp(dots)                                       # f32, in [0, 1]
        denom = jnp.sum(e, axis=-1, keepdims=True)              # (b_tile, N, 1)
        if compute_dtype is not None:
            e = e.astype(compute_dtype)       # safe: e <= 1 after max-subtraction
        out_h = lax.dot_general(e, vh, (((2,), (1,)), ((0,), (0,))),
                                preferred_element_type=jnp.float32)  # (b_tile,N,d)
        if compute_dtype is not None:
            out_h = out_h * pl.reciprocal(denom, approx=True)   # EUP slot, free-ish
        else:
            out_h = out_h / denom             # exact division for strict f32 check
        out_h = out_h.reshape(m, dim_head)
        if compute_dtype is not None:
            out_h = out_h.astype(compute_dtype)

        # Per-head slice of the output projection, accumulated in f32.
        y = y + jnp.dot(out_h, wout_ref[h], preferred_element_type=jnp.float32)

    o_ref[...] = y.reshape(b_tile, n, dim_out).astype(o_ref.dtype)


# ---------------------------------------------------------------------------
# Wrapper helpers
# ---------------------------------------------------------------------------

def _choose_b_tile(batch, n, target_rows=512, min_grid=2):
    """Largest divisor of `batch` keeping b_tile*N <= target_rows and grid >= 2."""
    if batch <= 1:
        return 1
    divisors = [t for t in range(1, batch + 1) if batch % t == 0]
    cand = [t for t in divisors if batch // t >= min_grid and t * n <= target_rows]
    if cand:
        return max(cand)
    cand = [t for t in divisors if batch // t >= min_grid]
    if cand:
        return min(cand)
    return 1


def _vmem_limit_bytes(b_tile, n, dim, dim_pad, inner, x_itemsize, w_itemsize):
    m = b_tile * n
    est = 0
    est += 2 * m * dim * x_itemsize                      # x block, double-buffered
    est += 2 * m * dim_pad * x_itemsize                  # out block, double-buffered
    est += 2 * (3 * dim * inner + inner * dim_pad + dim_pad) * w_itemsize  # weights
    est += 3 * m * inner * (4 + w_itemsize)              # q/k/v f32 + compute copies
    est += 2 * b_tile * n * n * 4                        # scores + exp
    est += m * dim_pad * 4 + m * inner * 4               # y accumulator + temporaries
    est = int(est * 1.5) + (1 << 20)
    # raise v5e's 16 MiB default; stay within v7x's 64 MiB physical VMEM.
    return max(32 * 1024 * 1024, min(64 * 1024 * 1024, est))


# ---------------------------------------------------------------------------
# Wrapper
# ---------------------------------------------------------------------------

def dense_attention(x, w_qkv, w_out, b_out, *, heads, dim_head,
                    compute_dtype=jnp.bfloat16, b_tile=None, pad_out_lanes=True):
    """Fused Dense_Attention forward.

    x: (B, N, dim); w_qkv: (dim, 3*inner); w_out: (inner, dim); b_out: (dim,).
    compute_dtype: bf16 (default) -> bf16 MXU operands with f32 accumulation and
    f32 softmax; None -> full-f32 validation path.
    """
    B, N, dim = x.shape
    inner = heads * dim_head
    assert w_qkv.shape == (dim, 3 * inner)
    assert w_out.shape == (inner, dim)
    scale = dim_head ** (-0.5)

    # Split the fused qkv weight so each of q/k/v comes from its own matmul
    # anchored at lane 0; fold the softmax scale into W_q (zero per-step cost).
    w_q = w_qkv[:, 0 * inner:1 * inner] * scale
    w_k = w_qkv[:, 1 * inner:2 * inner]
    w_v = w_qkv[:, 2 * inner:3 * inner]

    # Lane-dense output: pad projection columns to a multiple of 128 so the final
    # store is an unmasked full-lane vst; slice the padding off outside the kernel.
    if pad_out_lanes and dim % 128 != 0:
        dim_pad = ((dim + 127) // 128) * 128
    else:
        dim_pad = dim
    w_o, b_o = w_out, b_out
    if dim_pad != dim:
        w_o = jnp.pad(w_out, ((0, 0), (0, dim_pad - dim)))
        b_o = jnp.pad(b_out, (0, dim_pad - dim))
    w_o = w_o.reshape(heads, dim_head, dim_pad)
    b_o = b_o.reshape(1, dim_pad)

    if compute_dtype is not None:
        # Cast weights once here (not per grid step on the VPU); halves weight DMA.
        w_q = w_q.astype(compute_dtype)
        w_k = w_k.astype(compute_dtype)
        w_v = w_v.astype(compute_dtype)
        w_o = w_o.astype(compute_dtype)

    if b_tile is None:
        b_tile = _choose_b_tile(B, N)
    assert B % b_tile == 0
    grid = (B // b_tile,)

    kernel = functools.partial(
        _fused_attention_kernel, b_tile=b_tile, heads=heads, dim_head=dim_head,
        compute_dtype=compute_dtype)

    w_itemsize = 2 if compute_dtype is not None else 4
    vmem_limit = _vmem_limit_bytes(b_tile, N, dim, dim_pad, inner,
                                   x.dtype.itemsize, w_itemsize)

    y_pad = pl.pallas_call(
        kernel,
        out_shape=jax.ShapeDtypeStruct((B, N, dim_pad), x.dtype),
        grid=grid,
        in_specs=[
            pl.BlockSpec((b_tile, N, dim), lambda b: (b, 0, 0)),        # x tile
            pl.BlockSpec((dim, inner), lambda b: (0, 0)),               # W_q (scaled)
            pl.BlockSpec((dim, inner), lambda b: (0, 0)),               # W_k
            pl.BlockSpec((dim, inner), lambda b: (0, 0)),               # W_v
            pl.BlockSpec((heads, dim_head, dim_pad), lambda b: (0, 0, 0)),  # W_out
            pl.BlockSpec((1, dim_pad), lambda b: (0, 0)),               # b_out
        ],
        out_specs=pl.BlockSpec((b_tile, N, dim_pad), lambda b: (b, 0, 0)),
        compiler_params=pltpu.CompilerParams(
            dimension_semantics=("parallel",),      # batch axis feeds v7x's 2 TCs
            vmem_limit_bytes=vmem_limit),
    )(x, w_q, w_k, w_v, w_o, b_o)

    if dim_pad != dim:
        y_pad = y_pad[..., :dim]
    return y_pad


# ---------------------------------------------------------------------------
# Pure-JAX reference for validation
# ---------------------------------------------------------------------------

def dense_attention_ref(x, w_qkv, w_out, b_out, *, heads, dim_head):
    B, N, dim = x.shape
    inner = heads * dim_head
    qkv = x @ w_qkv
    q, k, v = jnp.split(qkv, 3, axis=-1)

    def split_heads(t):
        return jnp.transpose(t.reshape(B, N, heads, dim_head), (0, 2, 1, 3))

    q, k, v = map(split_heads, (q, k, v))
    dots = jnp.einsum("bhnd,bhmd->bhnm", q, k) * (dim_head ** -0.5)
    attn = jax.nn.softmax(dots, axis=-1)
    out = jnp.einsum("bhnm,bhmd->bhnd", attn, v)
    out = jnp.transpose(out, (0, 2, 1, 3)).reshape(B, N, inner)
    return out @ w_out + b_out


# ---------------------------------------------------------------------------

if __name__ == "__main__":
    # Small, deterministic config consistent with the module:
    # dim=32, heads=4, dim_head=16 -> inner_dim=64, project_out=True
    B, N, dim = 2, 8, 32
    heads, dim_head = 4, 16
    inner = heads * dim_head

    key = jax.random.PRNGKey(0)
    kx, kq, kw, kb = jax.random.split(key, 4)

    x = jax.random.normal(kx, (B, N, dim), dtype=jnp.float32)
    # Linear weights stored as (in, out) so the kernel computes x @ W (== x @ W_pt^T).
    w_qkv = jax.random.normal(kq, (dim, 3 * inner), dtype=jnp.float32) * (dim ** -0.5)
    w_out = jax.random.normal(kw, (inner, dim), dtype=jnp.float32) * (inner ** -0.5)
    b_out = jax.random.normal(kb, (dim,), dtype=jnp.float32) * 0.01

    y_ref = dense_attention_ref(x, w_qkv, w_out, b_out, heads=heads, dim_head=dim_head)

    # Strict f32 validation path (exact division, f32 MXU operands).
    y32 = dense_attention(x, w_qkv, w_out, b_out, heads=heads, dim_head=dim_head,
                          compute_dtype=None)
    y32 = jax.block_until_ready(y32)
    assert y32.shape == (B, N, dim)
    assert jnp.allclose(y32, y_ref, atol=1e-4, rtol=1e-4), "f32 path mismatch vs reference"

    # Default performance path: bf16 MXU operands, f32 accumulation / softmax,
    # EUP approx reciprocal -> loose tolerance.
    y = dense_attention(x, w_qkv, w_out, b_out, heads=heads, dim_head=dim_head)
    y = jax.block_until_ready(y)
    assert y.shape == (B, N, dim)
    assert jnp.allclose(y, y_ref, atol=1e-1, rtol=1e-1), "bf16 path mismatch vs reference"

    print("KERNEL_OK")
</pallas_src>

<mosaic_0001>
module attributes {stable_mosaic.version = 11 : i64} {
  func.func @_fused_attention_kernel(%arg0: i32, %arg1: memref<1x8x32xf32, #tpu.memory_space<vmem>>, %arg2: memref<32x64xf32, #tpu.memory_space<vmem>>, %arg3: memref<32x64xf32, #tpu.memory_space<vmem>>, %arg4: memref<32x64xf32, #tpu.memory_space<vmem>>, %arg5: memref<4x16x128xf32, #tpu.memory_space<vmem>>, %arg6: memref<1x128xf32, #tpu.memory_space<vmem>>, %arg7: memref<1x8x128xf32, #tpu.memory_space<vmem>>) attributes {dimension_semantics = [#tpu.dimension_semantics<parallel>], iteration_bounds = array<i64: 2>, scalar_prefetch = 0 : i64, scratch_operands = 0 : i64, tpu.core_type = #tpu.core_type<tc>, window_params = [{transform_indices = @transform_0, window_bounds = array<i64: 1, 8, 32>}, {pipeline_mode = #tpu.pipeline_mode<synchronous>, transform_indices = @transform_1, window_bounds = array<i64: 32, 64>}, {pipeline_mode = #tpu.pipeline_mode<synchronous>, transform_indices = @transform_2, window_bounds = array<i64: 32, 64>}, {pipeline_mode = #tpu.pipeline_mode<synchronous>, transform_indices = @transform_3, window_bounds = array<i64: 32, 64>}, {pipeline_mode = #tpu.pipeline_mode<synchronous>, transform_indices = @transform_4, window_bounds = array<i64: 4, 16, 128>}, {pipeline_mode = #tpu.pipeline_mode<synchronous>, transform_indices = @transform_5, window_bounds = array<i64: 1, 128>}, {transform_indices = @transform_6, window_bounds = array<i64: 1, 8, 128>}]} {
    %c0 = arith.constant 0 : index
    %c0_0 = arith.constant 0 : index
    %c0_1 = arith.constant 0 : index
    %0 = vector.load %arg1[%c0, %c0_0, %c0_1] : memref<1x8x32xf32, #tpu.memory_space<vmem>>, vector<1x8x32xf32>
    %1 = vector.shape_cast %0 : vector<1x8x32xf32> to vector<8x32xf32>
    %c0_2 = arith.constant 0 : index
    %c0_3 = arith.constant 0 : index
    %2 = vector.load %arg2[%c0_2, %c0_3] : memref<32x64xf32, #tpu.memory_space<vmem>>, vector<32x64xf32>
    %cst = arith.constant dense<0.000000e+00> : vector<8x64xf32>
    %3 = tpu.matmul %1, %2, %cst {dimension_numbers = #tpu.dot_dimension_numbers<[1], [0], [0], [1], [0, 0, 1, 1], [], []>} : vector<8x32xf32>, vector<32x64xf32>, vector<8x64xf32> -> vector<8x64xf32>
    %c0_4 = arith.constant 0 : index
    %c0_5 = arith.constant 0 : index
    %4 = vector.load %arg3[%c0_4, %c0_5] : memref<32x64xf32, #tpu.memory_space<vmem>>, vector<32x64xf32>
    %cst_6 = arith.constant dense<0.000000e+00> : vector<8x64xf32>
    %5 = tpu.matmul %1, %4, %cst_6 {dimension_numbers = #tpu.dot_dimension_numbers<[1], [0], [0], [1], [0, 0, 1, 1], [], []>} : vector<8x32xf32>, vector<32x64xf32>, vector<8x64xf32> -> vector<8x64xf32>
    %c0_7 = arith.constant 0 : index
    %c0_8 = arith.constant 0 : index
    %6 = vector.load %arg4[%c0_7, %c0_8] : memref<32x64xf32, #tpu.memory_space<vmem>>, vector<32x64xf32>
    %cst_9 = arith.constant dense<0.000000e+00> : vector<8x64xf32>
    %7 = tpu.matmul %1, %6, %cst_9 {dimension_numbers = #tpu.dot_dimension_numbers<[1], [0], [0], [1], [0, 0, 1, 1], [], []>} : vector<8x32xf32>, vector<32x64xf32>, vector<8x64xf32> -> vector<8x64xf32>
    %8 = vector.shape_cast %3 : vector<8x64xf32> to vector<1x8x64xf32>
    %9 = vector.shape_cast %5 : vector<8x64xf32> to vector<1x8x64xf32>
    %10 = vector.shape_cast %7 : vector<8x64xf32> to vector<1x8x64xf32>
    %c0_10 = arith.constant 0 : index
    %c0_11 = arith.constant 0 : index
    %11 = vector.load %arg6[%c0_10, %c0_11] : memref<1x128xf32, #tpu.memory_space<vmem>>, vector<1x128xf32>
    %12 = vector.shape_cast %11 : vector<1x128xf32> to vector<1x128xf32>
    %13 = vector.broadcast %12 : vector<1x128xf32> to vector<8x128xf32>
    %14 = vector.extract_strided_slice %8 {offsets = [0, 0, 0], sizes = [1, 8, 16], strides = [1, 1, 1]} : vector<1x8x64xf32> to vector<1x8x16xf32>
    %15 = vector.extract_strided_slice %9 {offsets = [0, 0, 0], sizes = [1, 8, 16], strides = [1, 1, 1]} : vector<1x8x64xf32> to vector<1x8x16xf32>
    %16 = vector.extract_strided_slice %10 {offsets = [0, 0, 0], sizes = [1, 8, 16], strides = [1, 1, 1]} : vector<1x8x64xf32> to vector<1x8x16xf32>
    %cst_12 = arith.constant dense<0.000000e+00> : vector<1x8x8xf32>
    %17 = tpu.matmul %14, %15, %cst_12 {dimension_numbers = #tpu.dot_dimension_numbers<[2], [2], [1], [1], [0, 0, 0, 1, 1, 1], [0], [0]>} : vector<1x8x16xf32>, vector<1x8x16xf32>, vector<1x8x8xf32> -> vector<1x8x8xf32>
    %cst_13 = arith.constant dense<0xFF800000> : vector<1x8xf32>
    %18 = vector.multi_reduction <maximumf>, %17, %cst_13 [2] : vector<1x8x8xf32> to vector<1x8xf32>
    %19 = vector.shape_cast %18 : vector<1x8xf32> to vector<1x8x1xf32>
    %20 = vector.broadcast %19 : vector<1x8x1xf32> to vector<1x8x8xf32>
    %21 = arith.subf %17, %20 : vector<1x8x8xf32>
    %22 = math.exp %21 : vector<1x8x8xf32>
    %cst_14 = arith.constant dense<0.000000e+00> : vector<1x8xf32>
    %23 = vector.multi_reduction <add>, %22, %cst_14 [2] : vector<1x8x8xf32> to vector<1x8xf32>
    %24 = vector.shape_cast %23 : vector<1x8xf32> to vector<1x8x1xf32>
    %cst_15 = arith.constant dense<0.000000e+00> : vector<1x8x16xf32>
    %25 = tpu.matmul %22, %16, %cst_15 {dimension_numbers = #tpu.dot_dimension_numbers<[2], [1], [1], [2], [0, 0, 0, 1, 1, 2], [0], [0]>} : vector<1x8x8xf32>, vector<1x8x16xf32>, vector<1x8x16xf32> -> vector<1x8x16xf32>
    %26 = vector.broadcast %24 : vector<1x8x1xf32> to vector<1x8x16xf32>
    %27 = arith.divf %25, %26 : vector<1x8x16xf32>
    %28 = vector.shape_cast %27 : vector<1x8x16xf32> to vector<8x16xf32>
    %c0_16 = arith.constant 0 : index
    %c0_17 = arith.constant 0 : index
    %c0_18 = arith.constant 0 : index
    %29 = vector.load %arg5[%c0_16, %c0_17, %c0_18] : memref<4x16x128xf32, #tpu.memory_space<vmem>>, vector<1x16x128xf32>
    %30 = vector.shape_cast %29 : vector<1x16x128xf32> to vector<16x128xf32>
    %cst_19 = arith.constant dense<0.000000e+00> : vector<8x128xf32>
    %31 = tpu.matmul %28, %30, %cst_19 {dimension_numbers = #tpu.dot_dimension_numbers<[1], [0], [0], [1], [0, 0, 1, 1], [], []>} : vector<8x16xf32>, vector<16x128xf32>, vector<8x128xf32> -> vector<8x128xf32>
    %32 = arith.addf %13, %31 : vector<8x128xf32>
    %33 = vector.extract_strided_slice %8 {offsets = [0, 0, 16], sizes = [1, 8, 16], strides = [1, 1, 1]} : vector<1x8x64xf32> to vector<1x8x16xf32>
    %34 = vector.extract_strided_slice %9 {offsets = [0, 0, 16], sizes = [1, 8, 16], strides = [1, 1, 1]} : vector<1x8x64xf32> to vector<1x8x16xf32>
    %35 = vector.extract_strided_slice %10 {offsets = [0, 0, 16], sizes = [1, 8, 16], strides = [1, 1, 1]} : vector<1x8x64xf32> to vector<1x8x16xf32>
    %cst_20 = arith.constant dense<0.000000e+00> : vector<1x8x8xf32>
    %36 = tpu.matmul %33, %34, %cst_20 {dimension_numbers = #tpu.dot_dimension_numbers<[2], [2], [1], [1], [0, 0, 0, 1, 1, 1], [0], [0]>} : vector<1x8x16xf32>, vector<1x8x16xf32>, vector<1x8x8xf32> -> vector<1x8x8xf32>
    %cst_21 = arith.constant dense<0xFF800000> : vector<1x8xf32>
    %37 = vector.multi_reduction <maximumf>, %36, %cst_21 [2] : vector<1x8x8xf32> to vector<1x8xf32>
    %38 = vector.shape_cast %37 : vector<1x8xf32> to vector<1x8x1xf32>
    %39 = vector.broadcast %38 : vector<1x8x1xf32> to vector<1x8x8xf32>
    %40 = arith.subf %36, %39 : vector<1x8x8xf32>
    %41 = math.exp %40 : vector<1x8x8xf32>
    %cst_22 = arith.constant dense<0.000000e+00> : vector<1x8xf32>
    %42 = vector.multi_reduction <add>, %41, %cst_22 [2] : vector<1x8x8xf32> to vector<1x8xf32>
    %43 = vector.shape_cast %42 : vector<1x8xf32> to vector<1x8x1xf32>
    %cst_23 = arith.constant dense<0.000000e+00> : vector<1x8x16xf32>
    %44 = tpu.matmul %41, %35, %cst_23 {dimension_numbers = #tpu.dot_dimension_numbers<[2], [1], [1], [2], [0, 0, 0, 1, 1, 2], [0], [0]>} : vector<1x8x8xf32>, vector<1x8x16xf32>, vector<1x8x16xf32> -> vector<1x8x16xf32>
    %45 = vector.broadcast %43 : vector<1x8x1xf32> to vector<1x8x16xf32>
    %46 = arith.divf %44, %45 : vector<1x8x16xf32>
    %47 = vector.shape_cast %46 : vector<1x8x16xf32> to vector<8x16xf32>
    %c1 = arith.constant 1 : index
    %c0_24 = arith.constant 0 : index
    %c0_25 = arith.constant 0 : index
    %48 = vector.load %arg5[%c1, %c0_24, %c0_25] : memref<4x16x128xf32, #tpu.memory_space<vmem>>, vector<1x16x128xf32>
    %49 = vector.shape_cast %48 : vector<1x16x128xf32> to vector<16x128xf32>
    %cst_26 = arith.constant dense<0.000000e+00> : vector<8x128xf32>
    %50 = tpu.matmul %47, %49, %cst_26 {dimension_numbers = #tpu.dot_dimension_numbers<[1], [0], [0], [1], [0, 0, 1, 1], [], []>} : vector<8x16xf32>, vector<16x128xf32>, vector<8x128xf32> -> vector<8x128xf32>
    %51 = arith.addf %32, %50 : vector<8x128xf32>
    %52 = vector.extract_strided_slice %8 {offsets = [0, 0, 32], sizes = [1, 8, 16], strides = [1, 1, 1]} : vector<1x8x64xf32> to vector<1x8x16xf32>
    %53 = vector.extract_strided_slice %9 {offsets = [0, 0, 32], sizes = [1, 8, 16], strides = [1, 1, 1]} : vector<1x8x64xf32> to vector<1x8x16xf32>
    %54 = vector.extract_strided_slice %10 {offsets = [0, 0, 32], sizes = [1, 8, 16], strides = [1, 1, 1]} : vector<1x8x64xf32> to vector<1x8x16xf32>
    %cst_27 = arith.constant dense<0.000000e+00> : vector<1x8x8xf32>
    %55 = tpu.matmul %52, %53, %cst_27 {dimension_numbers = #tpu.dot_dimension_numbers<[2], [2], [1], [1], [0, 0, 0, 1, 1, 1], [0], [0]>} : vector<1x8x16xf32>, vector<1x8x16xf32>, vector<1x8x8xf32> -> vector<1x8x8xf32>
    %cst_28 = arith.constant dense<0xFF800000> : vector<1x8xf32>
    %56 = vector.multi_reduction <maximumf>, %55, %cst_28 [2] : vector<1x8x8xf32> to vector<1x8xf32>
    %57 = vector.shape_cast %56 : vector<1x8xf32> to vector<1x8x1xf32>
    %58 = vector.broadcast %57 : vector<1x8x1xf32> to vector<1x8x8xf32>
    %59 = arith.subf %55, %58 : vector<1x8x8xf32>
    %60 = math.exp %59 : vector<1x8x8xf32>
    %cst_29 = arith.constant dense<0.000000e+00> : vector<1x8xf32>
    %61 = vector.multi_reduction <add>, %60, %cst_29 [2] : vector<1x8x8xf32> to vector<1x8xf32>
    %62 = vector.shape_cast %61 : vector<1x8xf32> to vector<1x8x1xf32>
    %cst_30 = arith.constant dense<0.000000e+00> : vector<1x8x16xf32>
    %63 = tpu.matmul %60, %54, %cst_30 {dimension_numbers = #tpu.dot_dimension_numbers<[2], [1], [1], [2], [0, 0, 0, 1, 1, 2], [0], [0]>} : vector<1x8x8xf32>, vector<1x8x16xf32>, vector<1x8x16xf32> -> vector<1x8x16xf32>
    %64 = vector.broadcast %62 : vector<1x8x1xf32> to vector<1x8x16xf32>
    %65 = arith.divf %63, %64 : vector<1x8x16xf32>
    %66 = vector.shape_cast %65 : vector<1x8x16xf32> to vector<8x16xf32>
    %c2 = arith.constant 2 : index
    %c0_31 = arith.constant 0 : index
    %c0_32 = arith.constant 0 : index
    %67 = vector.load %arg5[%c2, %c0_31, %c0_32] : memref<4x16x128xf32, #tpu.memory_space<vmem>>, vector<1x16x128xf32>
    %68 = vector.shape_cast %67 : vector<1x16x128xf32> to vector<16x128xf32>
    %cst_33 = arith.constant dense<0.000000e+00> : vector<8x128xf32>
    %69 = tpu.matmul %66, %68, %cst_33 {dimension_numbers = #tpu.dot_dimension_numbers<[1], [0], [0], [1], [0, 0, 1, 1], [], []>} : vector<8x16xf32>, vector<16x128xf32>, vector<8x128xf32> -> vector<8x128xf32>
    %70 = arith.addf %51, %69 : vector<8x128xf32>
    %71 = vector.extract_strided_slice %8 {offsets = [0, 0, 48], sizes = [1, 8, 16], strides = [1, 1, 1]} : vector<1x8x64xf32> to vector<1x8x16xf32>
    %72 = vector.extract_strided_slice %9 {offsets = [0, 0, 48], sizes = [1, 8, 16], strides = [1, 1, 1]} : vector<1x8x64xf32> to vector<1x8x16xf32>
    %73 = vector.extract_strided_slice %10 {offsets = [0, 0, 48], sizes = [1, 8, 16], strides = [1, 1, 1]} : vector<1x8x64xf32> to vector<1x8x16xf32>
    %cst_34 = arith.constant dense<0.000000e+00> : vector<1x8x8xf32>
    %74 = tpu.matmul %71, %72, %cst_34 {dimension_numbers = #tpu.dot_dimension_numbers<[2], [2], [1], [1], [0, 0, 0, 1, 1, 1], [0], [0]>} : vector<1x8x16xf32>, vector<1x8x16xf32>, vector<1x8x8xf32> -> vector<1x8x8xf32>
    %cst_35 = arith.constant dense<0xFF800000> : vector<1x8xf32>
    %75 = vector.multi_reduction <maximumf>, %74, %cst_35 [2] : vector<1x8x8xf32> to vector<1x8xf32>
    %76 = vector.shape_cast %75 : vector<1x8xf32> to vector<1x8x1xf32>
    %77 = vector.broadcast %76 : vector<1x8x1xf32> to vector<1x8x8xf32>
    %78 = arith.subf %74, %77 : vector<1x8x8xf32>
    %79 = math.exp %78 : vector<1x8x8xf32>
    %cst_36 = arith.constant dense<0.000000e+00> : vector<1x8xf32>
    %80 = vector.multi_reduction <add>, %79, %cst_36 [2] : vector<1x8x8xf32> to vector<1x8xf32>
    %81 = vector.shape_cast %80 : vector<1x8xf32> to vector<1x8x1xf32>
    %cst_37 = arith.constant dense<0.000000e+00> : vector<1x8x16xf32>
    %82 = tpu.matmul %79, %73, %cst_37 {dimension_numbers = #tpu.dot_dimension_numbers<[2], [1], [1], [2], [0, 0, 0, 1, 1, 2], [0], [0]>} : vector<1x8x8xf32>, vector<1x8x16xf32>, vector<1x8x16xf32> -> vector<1x8x16xf32>
    %83 = vector.broadcast %81 : vector<1x8x1xf32> to vector<1x8x16xf32>
    %84 = arith.divf %82, %83 : vector<1x8x16xf32>
    %85 = vector.shape_cast %84 : vector<1x8x16xf32> to vector<8x16xf32>
    %c3 = arith.constant 3 : index
    %c0_38 = arith.constant 0 : index
    %c0_39 = arith.constant 0 : index
    %86 = vector.load %arg5[%c3, %c0_38, %c0_39] : memref<4x16x128xf32, #tpu.memory_space<vmem>>, vector<1x16x128xf32>
    %87 = vector.shape_cast %86 : vector<1x16x128xf32> to vector<16x128xf32>
    %cst_40 = arith.constant dense<0.000000e+00> : vector<8x128xf32>
    %88 = tpu.matmul %85, %87, %cst_40 {dimension_numbers = #tpu.dot_dimension_numbers<[1], [0], [0], [1], [0, 0, 1, 1], [], []>} : vector<8x16xf32>, vector<16x128xf32>, vector<8x128xf32> -> vector<8x128xf32>
    %89 = arith.addf %70, %88 : vector<8x128xf32>
    %90 = vector.shape_cast %89 : vector<8x128xf32> to vector<1x8x128xf32>
    %c0_41 = arith.constant 0 : index
    %c0_42 = arith.constant 0 : index
    %c0_43 = arith.constant 0 : index
    %91 = vector.load %arg7[%c0_41, %c0_42, %c0_43] : memref<1x8x128xf32, #tpu.memory_space<vmem>>, vector<1x8x128xf32>
    tpu.vector_store %arg7[%c0_41, %c0_42, %c0_43], %90 {strides = array<i32>} : memref<1x8x128xf32, #tpu.memory_space<vmem>>, vector<1x8x128xf32>,
    return
  }
  func.func @transform_0(%arg0: i32) -> (i32, i32, i32) {
    %c0_i32 = arith.constant 0 : i32
    %c0_i32_0 = arith.constant 0 : i32
    %c0_i32_1 = arith.constant 0 : i32
    return %arg0, %c0_i32, %c0_i32_0 : i32, i32, i32
  }
  func.func @transform_1(%arg0: i32) -> (i32, i32) {
    %c0_i32 = arith.constant 0 : i32
    %c0_i32_0 = arith.constant 0 : i32
    %c0_i32_1 = arith.constant 0 : i32
    return %c0_i32, %c0_i32_0 : i32, i32
  }
  func.func @transform_2(%arg0: i32) -> (i32, i32) {
    %c0_i32 = arith.constant 0 : i32
    %c0_i32_0 = arith.constant 0 : i32
    %c0_i32_1 = arith.constant 0 : i32
    return %c0_i32, %c0_i32_0 : i32, i32
  }
  func.func @transform_3(%arg0: i32) -> (i32, i32) {
    %c0_i32 = arith.constant 0 : i32
    %c0_i32_0 = arith.constant 0 : i32
    %c0_i32_1 = arith.constant 0 : i32
    return %c0_i32, %c0_i32_0 : i32, i32
  }
  func.func @transform_4(%arg0: i32) -> (i32, i32, i32) {
    %c0_i32 = arith.constant 0 : i32
    %c0_i32_0 = arith.constant 0 : i32
    %c0_i32_1 = arith.constant 0 : i32
    %c0_i32_2 = arith.constant 0 : i32
    return %c0_i32, %c0_i32_0, %c0_i32_1 : i32, i32, i32
  }
  func.func @transform_5(%arg0: i32) -> (i32, i32) {
    %c0_i32 = arith.constant 0 : i32
    %c0_i32_0 = arith.constant 0 : i32
    %c0_i32_1 = arith.constant 0 : i32
    return %c0_i32, %c0_i32_0 : i32, i32
  }
  func.func @transform_6(%arg0: i32) -> (i32, i32, i32) {
    %c0_i32 = arith.constant 0 : i32
    %c0_i32_0 = arith.constant 0 : i32
    %c0_i32_1 = arith.constant 0 : i32
    return %arg0, %c0_i32, %c0_i32_0 : i32, i32, i32
  }
}

</mosaic_0001>

<bundles_post_ra>
// kernel: tpu_custom_call.1
= control target key start
LH: loop header
LB: loop body
LE: loop exit
PB: predicated region body
PF: predicated region fallthrough
CT: control target
= control target key end

     0   :  { %11 = vsyncpa [#allocation3], 0  ;;  %s2637_s0 = inlined_call_operand.hbm [shape: f32[2,8,32], index: 0, kind: input, shape index: {}]   ;;  %s2638_s1 = inlined_call_operand.hbm [shape: f32[32,64], index: 1, kind: input, shape index: {}]   ;;  %s2639_s2 = inlined_call_operand.hbm [shape: f32[32,64], index: 2, kind: input, shape index: {}]   ;;  %s2640_s3 = inlined_call_operand.hbm [shape: f32[32,64], index: 3, kind: input, shape index: {}]   ;;  %s2641_s4 = inlined_call_operand.hbm [shape: f32[4,16,128], index: 4, kind: input, shape index: {}]   ;;  %s2642_s5 = inlined_call_operand.vmem [shape: f32[1,128], index: 5, kind: input, shape index: {}]   ;;  %s2643_s6 = inlined_call_operand.hbm [shape: f32[2,8,128], index: 6, kind: output, shape index: {}]  }
   0x1   :  { %13 = vsyncpa [#allocation3 + $0x1], 0 }
   0x2   :  { %14 = vsyncpa [#allocation6], 0 }
   0x3   :  { %15 = vsyncpa [#allocation9], 0 }
   0x4   :  { %16 = vsyncpa [#allocation4], 0 }
   0x5   :  { %18 = vsyncpa [#allocation4 + $0x1], 0  ;;  %s2245_s21 = smov 0   ;;  %s2247_s22 = smov 0  }
   0x6   :  { %s2249_s23 = smov 0   ;;  %s2251_s24 = smov 0  }
   0x7 LB: > { %s2196_s25 = smov [#allocation5]   ;;  %s2266_s27 = sadd.s32 4294967295, %s2194_s24   ;;  %s2194_s24 = sphi %s2251_s24, %s2667_s24   ;;  %s2190_s23 = sphi %s2249_s23, %s2666_s23   ;;  %s2186_s22 = sphi %s2247_s22, %s2665_s22   ;;  %s2182_s21 = sphi %s2245_s21, %s2664_s21  }
   0x8   : > { %s198_s26 = sshll.u32 %s2196_s25, 4  ;;  %p1648_p0 = scmp.ge.s32.totalorder %s2194_s24, 1  ;;  %s2271_s26 = int_to_ptr.vmem [resolvable:$true] %s198_s26 }
   0x9   : > { %p2644_p1 = scmp.eq.s32.totalorder %s2266_s27, 0  ;;  %p186_p2 = scmp.lt.s32.totalorder %s2194_s24, 3 }
   0xa   : > { %s2197_s29 = smov [#allocation8]   ;;  %s2198_s8 = smov [#allocation7]  }
   0xb   : > { %p2273_p3 = pnand %p1648_p0, %p186_p2  ;;  %s224_s30 = sshll.u32 %s2197_s29, 4  ;;  %s2286_s30 = int_to_ptr.vmem [resolvable:$true] %s224_s30 }
   0xc   : > { %s211_s9 = sshll.u32 %s2198_s8, 4  ;;  %s1978_s12 = scalar_lea.hbm %s2638_s1, 512  ;;  %s2288_s9 = int_to_ptr.vmem [resolvable:$true] %s211_s9 }
   0xd   : > { %s2647_s28 = scalar_select %p2273_p3, 1, 0 }
   0xe   : > { %p1887_p5 = pneg %p2273_p3  ;;  %p1979_p7 = scmp.ne.s32.totalorder %s2638_s1, %s1978_s12 }
   0xf   : > { %p1985_p11 = scmp.lt.u32.totalorder %s1978_s12, %s2638_s1 }
  0x10   : > { %p2282_p6 = pnand %p1887_p5, %p2644_p1 }
  0x12   : > { %p2298_p8 = pneg %p2282_p6 }
  0x14   : > { %p1981_p9 = pnand %p2298_p8, %p1979_p7 }
  0x16   : > { %p1982_p10 = pneg %p1981_p9 }
  0x18   : > { %p1987_p12 = pnand %p1985_p11, %p1982_p10 }
  0x1a   : > { %1990 = shalt.err (!%p1987_p12)
}
  0x1b   : > { %s1991_s18 = scalar_lea.vmem %s2271_s26, 512  ;;  %p1999_p5 = scmp.lt.s32.totalorder %s2271_s26, %s2271_s26 }
  0x1c   : > { %p1992_p13 = scmp.ne.s32.totalorder %s2271_s26, %s1991_s18  ;;  %p2000_p4 = scmp.lt.s32.totalorder %s1991_s18, %s1991_s18 }
  0x1e   : > { %p1994_p0 = pnand %p1992_p13, %p2298_p8  ;;  %p2001_p7 = por %p2000_p4, %p1999_p5 }
  0x20   : > { %p1995_p2 = pneg %p1994_p0 }
  0x22   : > { %p2002_p9 = pnand %p2001_p7, %p1995_p2 }
  0x24   : > { %2005 = shalt.err (!%p2002_p9)
}
  0x25   : > { %s2199_s19 = smov 128   ;;  %s2200_s20 = smov 8  }
  0x26   : > { %1890 = dma.hbm_to_vmem [thread:$0]  (!%p2282_p6), %s2638_s1, 512, %s2271_s26, [#allocation6], %s2199_s19, %s2199_s19, %s2200_s20  }
  0x27   : > { %s2006_s11 = scalar_lea.hbm %s2640_s3, 512 }
  0x28   : > { %p2007_p4 = scmp.ne.s32.totalorder %s2640_s3, %s2006_s11  ;;  %p2013_p12 = scmp.lt.u32.totalorder %s2006_s11, %s2640_s3 }
  0x2a   : > { %p2009_p10 = pnand %p2007_p4, %p2298_p8 }
  0x2c   : > { %p2010_p11 = pneg %p2009_p10 }
  0x2e   : > { %p2015_p13 = pnand %p2013_p12, %p2010_p11 }
  0x30   : > { %2018 = shalt.err (!%p2015_p13)
}
  0x31   : > { %s2019_s26 = scalar_lea.vmem %s2286_s30, 512  ;;  %p2027_p7 = scmp.lt.s32.totalorder %s2286_s30, %s2286_s30 }
  0x32   : > { %p2020_p0 = scmp.ne.s32.totalorder %s2286_s30, %s2019_s26  ;;  %p2028_p9 = scmp.lt.s32.totalorder %s2019_s26, %s2019_s26 }
  0x34   : > { %p2022_p2 = pnand %p2020_p0, %p2298_p8  ;;  %p2029_p4 = por %p2028_p9, %p2027_p7 }
  0x36   : > { %p2023_p5 = pneg %p2022_p2 }
  0x38   : > { %p2030_p10 = pnand %p2029_p4, %p2023_p5 }
  0x3a   : > { %2033 = shalt.err (!%p2030_p10)
}
  0x3b   : > { %1896 = dma.hbm_to_vmem [thread:$0]  (!%p2282_p6), %s2640_s3, 512, %s2286_s30, [#allocation9], %s2199_s19, %s2199_s19, %s2200_s20  }
  0x3c   : > { %s2034_s8 = scalar_lea.hbm %s2639_s2, 512 }
  0x3d   : > { %p2035_p11 = scmp.ne.s32.totalorder %s2639_s2, %s2034_s8  ;;  %p2041_p0 = scmp.lt.u32.totalorder %s2034_s8, %s2639_s2 }
  0x3f   : > { %p2037_p12 = pnand %p2035_p11, %p2298_p8 }
  0x41   : > { %p2038_p13 = pneg %p2037_p12 }
  0x43   : > { %p2043_p2 = pnand %p2041_p0, %p2038_p13 }
  0x45   : > { %2046 = shalt.err (!%p2043_p2)
}
  0x46   : > { %s2047_s30 = scalar_lea.vmem %s2288_s9, 512  ;;  %p2055_p4 = scmp.lt.s32.totalorder %s2288_s9, %s2288_s9 }
  0x47   : > { %p2048_p5 = scmp.ne.s32.totalorder %s2288_s9, %s2047_s30  ;;  %p2056_p10 = scmp.lt.s32.totalorder %s2047_s30, %s2047_s30 }
  0x49   : > { %p2050_p7 = pnand %p2048_p5, %p2298_p8  ;;  %p2057_p11 = por %p2056_p10, %p2055_p4 }
  0x4b   : > { %p2051_p9 = pneg %p2050_p7 }
  0x4d   : > { %p2058_p12 = pnand %p2057_p11, %p2051_p9 }
  0x4f   : > { %2061 = shalt.err (!%p2058_p12)
}
  0x50   : > { %1893 = dma.hbm_to_vmem [thread:$0]  (!%p2282_p6), %s2639_s2, 512, %s2288_s9, [#allocation6], %s2199_s19, %s2199_s19, %s2200_s20  }
  0x51   : > { %s2201_s26 = smov [#allocation10]   ;;  %s2062_s29 = scalar_lea.hbm %s2641_s4, 1024 }
  0x52   : > { %s237_s17 = sshll.u32 %s2201_s26, 4  ;;  %p2063_p13 = scmp.ne.s32.totalorder %s2641_s4, %s2062_s29  ;;  %s238_s17 = int_to_ptr.vmem [resolvable:$true] %s237_s17 }
  0x53   : > { %p2069_p5 = scmp.lt.u32.totalorder %s2062_s29, %s2641_s4 }
  0x54   : > { %p2065_p0 = pnand %p2063_p13, %p2298_p8 }
  0x56   : > { %p2066_p2 = pneg %p2065_p0 }
  0x58   : > { %p2071_p7 = pnand %p2069_p5, %p2066_p2 }
  0x5a   : > { %2074 = shalt.err (!%p2071_p7)
}
  0x5b   : > { %s2075_s9 = scalar_lea.vmem %s238_s17, 1024  ;;  %p2083_p11 = scmp.lt.s32.totalorder %s238_s17, %s238_s17 }
  0x5c   : > { %p2076_p9 = scmp.ne.s32.totalorder %s238_s17, %s2075_s9  ;;  %p2084_p12 = scmp.lt.s32.totalorder %s2075_s9, %s2075_s9 }
  0x5e   : > { %p2078_p4 = pnand %p2076_p9, %p2298_p8  ;;  %p2085_p1 = por %p2084_p12, %p2083_p11 }
  0x60   : > { %p2079_p10 = pneg %p2078_p4 }
  0x62   : > { %p2086_p3 = pnand %p2085_p1, %p2079_p10 }
  0x64   : > { %2089 = shalt.err (!%p2086_p3)
}
  0x65   : > { %1899 = dma.hbm_to_vmem [thread:$0]  (!%p2282_p6), %s2641_s4, 1024, %s238_s17, [#allocation9], %s2199_s19, %s2199_s19, %s2200_s20  }
  0x66   : > { %s1647_s7 = sadd.s32 4294967294, %s2194_s24   ;;  %s2397_s15 = sadd.s32 1, %s2194_s24  }
  0x67   : > { %s28_s14 = ssub.s32 %s2194_s24, %s2397_s15  ;;  %s31_s16 = sadd.s32 1, %s2190_s23 }
  0x68   : > { %p29_p1 = scmp.eq.s32.totalorder %s28_s14, 0  ;;  %p38_p3 = scmp.ne.s32.totalorder %s2190_s23, %s2186_s22 }
  0x69   : > { %p39_p8 = scmp.eq.s32.totalorder %s2194_s24, 0  ;;  %p44_p13 = scmp.ne.s32.totalorder %s2186_s22, %s2182_s21 }
  0x6a   : > { %s2408_s26 = scalar_select %p29_p1, %s2190_s23, %s31_s16  }
  0x6b   : > { %p2410_p0 = por %p39_p8, %p38_p3  ;;  %p2651_p2 = scmp.eq.s32.totalorder %s2266_s27, 0 }
  0x6c   : > { %p173_p5 = scmp.eq.s32.totalorder %s2266_s27, 1  ;;  %p179_p7 = scmp.eq.s32.totalorder %s1647_s7, 1 }
  0x6d   : > { %p2416_p6 = por %p2651_p2, %p44_p13  ;;  %p1912_p9 = scmp.lt.s32.totalorder %s2194_s24, 2 }
  0x6e   : > { %s254_s20 = sand.u32 1, %s2190_s23   ;;  %p2423_p4 = por %p173_p5, %p38_p3 }
  0x6f   : > { %p2427_p10 = por %p179_p7, %p44_p13  ;;  %s1654_s29 = sshll.u32 %s254_s20, 3 }
  0x70   : > { %s2653_s17 = scalar_select %p2423_p4, 1, 0 }
  0x71   : > { %s2654_s25 = scalar_select %p2427_p10, 1, 0 }
  0x72   : > { %s1655_s8 = sshll.u32 %s2194_s24, 7  ;;  %s258_s9 = scalar_lea.vmem [#allocation2], %s1654_s29 }
  0x73   : > { %s2435_s12 = scalar_lea.hbm %s2637_s0, %s1655_s8  ;;  %s265_s13 = sshll.u32 %s258_s9, 4  ;;  %s2437_s13 = int_to_ptr.vmem [resolvable:$true] %s265_s13 }
  0x74   : > { %p2441_p11 = pnand %p1912_p9, %p2410_p0  ;;  %s255_s7 = scalar_lea.sflag [#allocation3], %s254_s20 }
  0x75   : > { %s2090_s14 = scalar_lea.hbm %s2435_s12, 128  ;;  %s2095_s8 = scalar_lea.hbm %s2637_s0, 256 }
  0x76   : > { %p2091_p12 = scmp.ne.s32.totalorder %s2435_s12, %s2090_s14  ;;  %p2092_p1 = pneg %p2441_p11 }
  0x77   : > { %p2096_p13 = scmp.lt.u32.totalorder %s2435_s12, %s2637_s0  ;;  %p2097_p0 = scmp.lt.u32.totalorder %s2095_s8, %s2090_s14 }
  0x78   : > { %p2093_p3 = pnand %p2092_p1, %p2091_p12  ;;  %p2099_p5 = scmp.lt.u32.totalorder %s2090_s14, %s2435_s12 }
  0x79   : > { %p2098_p2 = por %p2097_p0, %p2096_p13 }
  0x7a   : > { %p2094_p8 = pneg %p2093_p3 }
  0x7b   : > { %p2100_p7 = por %p2099_p5, %p2098_p2 }
  0x7d   : > { %p2101_p9 = pnand %p2100_p7, %p2094_p8 }
  0x7f   : > { %2104 = shalt.err (!%p2101_p9)
}
  0x80   : > { %s2105_s20 = scalar_lea.vmem %s2437_s13, 128  ;;  %s2202_s11 = smov [#allocation2]  }
  0x81   : > { %p2106_p12 = scmp.ne.s32.totalorder %s2437_s13, %s2105_s20  ;;  %s2110_s9 = sshll.u32 %s2202_s11, 4  ;;  %s2111_s9 = int_to_ptr.vmem [resolvable:$false] %s2110_s9 }
  0x82   : > { %s2112_s16 = scalar_lea.vmem %s2111_s9, 256  ;;  %p2113_p4 = scmp.lt.s32.totalorder %s2437_s13, %s2111_s9 }
  0x83   : > { %p2108_p3 = pnand %p2106_p12, %p2092_p1  ;;  %p2114_p13 = scmp.lt.s32.totalorder %s2112_s16, %s2105_s20 }
  0x85   : > { %p2109_p10 = pneg %p2108_p3  ;;  %p2115_p0 = por %p2114_p13, %p2113_p4 }
  0x87   : > { %p2116_p2 = pnand %p2115_p0, %p2109_p10 }
  0x89   : > { %2119 = shalt.err (!%p2116_p2)
}
  0x8a   : > { %1903 = dma.hbm_to_vmem [thread:$0]  (!%p2441_p11), %s2435_s12, 128, %s2437_s13, %s255_s7  }
  0x8b   : > { %p2656_p8 = scmp.ne.s32.totalorder %s2647_s28, 0 }
  0x8c   : > { %s2473_s14 = sand.u32 (!%p2656_p8), 1, %s2186_s22  }
  0x8d   : > { %274 = sbr.rel (%p2656_p8) target bundleno = 2158 (0x86e), region = 44  ;;  %s1657_s29 = sshll.u32 (!%p2656_p8), %s2473_s14, 3 }
  0x8e   : > { %s277_s8 = scalar_lea.sflag (!%p2656_p8), [#allocation3], %s2473_s14  ;;  %s2479_s18 = scalar_lea.vmem (!%p2656_p8), [#allocation2], %s1657_s29 }
  0x94   : > { %2165 = dma.done.wait (%p2416_p6), %s277_s8, 128  }
  0x95   : > { %2167 = vsyncadd (%p2416_p6), %s277_s8, 4294967168  ;;  %p2657_p4 = scmp.eq.s32.totalorder %s2266_s27, 0 }
  0x97   : > { %2169 = dma.done.wait (%p2657_p4), [#allocation6], 1024   ;;  %p2658_p10 = pmov %p2657_p4 }
  0x98   : > { %p2659_p11 = pmov %p2657_p4 }
  0x99   : > { %2171 = vsyncadd (%p2658_p10), [#allocation6], 4294966272 }
  0x9a   : > { %2173 = dma.done.wait (%p2659_p11), [#allocation9], 1536   ;;  %p2660_p1 = pmov %p2657_p4 }
  0x9b   : > { %v2203_v0 = vmov 0.0|0.0   ;;  %vm2204_vm0 = vmmov 0   ;;  %v2205_v1 = vmov 0.0   ;;  %v404_v2 = vld [vmem:[#allocation7] sm:$0xff]  ;;  %v405_v3 = vld [vmem:[#allocation7 + $0x8] sm:$0xff]  ;;  %v406_v7 = vld [vmem:[#allocation7 + $0x10] sm:$0xff] }
  0x9c   : > { %2175 = vsyncadd (%p2660_p1), [#allocation9], 4294965760  ;;  %1837 = vmatprep.subr.bf16.mxu1 %v2203_v0  ;;  %1831 = vmatprep.subr.bf16.mxu0 %v2203_v0  ;;  %v326_v4 = vld [vmem:[#allocation5] sm:$0xff]  ;;  %v1838_v5 = vpack.c.bf16 %v405_v3, %v404_v2  ;;  %v327_v6 = vld [vmem:[#allocation5 + $0x8] sm:$0xff]  ;;  %vm330_vm1 = vcmask 261120   ;;  %vm559_vm2 = vcmask 130048  }
  0x9d   : > { %1749 = vmatprep.mubr.msk.f32.mxu1 %vm2204_vm0, %v2205_v1  ;;  %1738 = vmatprep.mubr.msk.f32.mxu0 %vm2204_vm0, %v2205_v1  ;;  %v407_v8 = vld [vmem:[#allocation7 + $0x18] sm:$0xff]  ;;  %v1832_v9 = vpack.c.bf16 %v327_v6, %v326_v4  ;;  %v328_v10 = vld [vmem:[#allocation5 + $0x10] sm:$0xff]  ;;  %v478_v15 = vld [vmem:[#allocation8] sm:$0xff]  ;;  %s2206_s28 = smov 112   ;;  %s2207_s19 = smov 96   ;;  %vm636_vm3 = vcmask 64512  }
  0x9e   : > { %v329_v11 = vld [vmem:[#allocation5 + $0x18] sm:$0xff]  ;;  %1839 = vmatpush3.bf16.msra.mxu1 %v1838_v5  ;;  %v1841_v12 = vpack.c.bf16 %v407_v8, %v406_v7  ;;  %v479_v16 = vld [vmem:[#allocation8 + $0x8] sm:$0xff]  ;;  %v480_v17 = vld [vmem:[#allocation8 + $0x10] sm:$0xff]  ;;  %s2208_s12 = smov 80   ;;  %s1684_s7 = sshll.u32 %s2266_s27, 7 }
  0x9f   : > { %1833 = vmatpush3.bf16.msra.mxu0 %v1832_v9  ;;  %1840 = vmatprep.subr.bf16.mxu1 %v2203_v0  ;;  %v1835_v13 = vpack.c.bf16 %v329_v11, %v328_v10  ;;  %v325_v14 = vld [vmem:[%s2479_s18] sm:$0xff]  ;;  %v1844_v18 = vpack.c.bf16 %v479_v16, %v478_v15  ;;  %v721_v35 = vld [vmem:[#allocation10] sm:$0xff]  ;;  %v722_v36 = vld [vmem:[#allocation10 + $0x8] sm:$0xff]  ;;  %s324_s10 = scalar_lea.vmem [#allocation11], %s1657_s29  ;;  %s2593_s16 = scalar_lea.hbm %s2643_s6, %s1684_s7 }
  0xa0   : > { %1834 = vmatprep.subr.bf16.mxu0 %v2203_v0  ;;  %v481_v19 = vld [vmem:[#allocation8 + $0x18] sm:$0xff]  ;;  %v1850_v37 = vpack.c.bf16 %v722_v36, %v721_v35  ;;  %v964_v7 = vld [vmem:[#allocation10 + $0x10] sm:$0xff]  ;;  %s1539_s20 = sshll.u32 %s324_s10, 4  ;;  %s1526_s27 = scalar_lea.sflag [#allocation4], %s2473_s14  ;;  %s2595_s20 = int_to_ptr.vmem [resolvable:$true] %s1539_s20 }
  0xa1   : > { %v1847_v20 = vpack.c.bf16 %v481_v19, %v480_v17  ;;  %v965_v8 = vld [vmem:[#allocation10 + $0x18] sm:$0xff]  ;;  %s2120_s8 = scalar_lea.vmem %s2595_s20, 128  ;;  %p2661_p5 = scmp.ne.s32.totalorder %s2653_s17, 0 }
  0xa2   : > { %1842 = vmatpush3.bf16.msra.mxu1 %v1841_v12  ;;  %v1853_v9 = vpack.c.bf16 %v965_v8, %v964_v7  ;;  %v1206_v12 = vld [vmem:[#allocation10 + $0x20] sm:$0xff]  ;;  %p2121_p6 = scmp.ne.s32.totalorder %s2595_s20, %s2120_s8  ;;  %s2209_s29 = smov [#allocation11]  }
  0xa3   : > { %1836 = vmatpush3.bf16.msra.mxu0 %v1835_v13  ;;  %1763 = vmatprep.subr.mxu1 %v2205_v1  ;;  %v1207_v13 = vld [vmem:[#allocation10 + $0x28] sm:$0xff]  ;;  %s2124_s18 = sshll.u32 %s2209_s29, 4  ;;  %s2125_s18 = int_to_ptr.vmem [resolvable:$false] %s2124_s18 }
  0xa4   : > { %1843 = vmatprep.subr.bf16.mxu0 %v2203_v0  ;;  %v1856_v16 = vpack.c.bf16 %v1207_v13, %v1206_v12  ;;  %p2122_p7 = pnand %p2121_p6, %p2661_p5  ;;  %p2127_p12 = scmp.lt.s32.totalorder %s2595_s20, %s2125_s18 }
  0xa5   : > { %1750 = vmatmul.mubr.msk.f32.vlgmr.msra.gmra.mrb[0].mxu1 %vm330_vm1, %v325_v14 }
  0xa6   : > { %1739 = vmatmul.mubr.msk.f32.vlgmr.msra.gmra.mrb[0].mxu0 %vm330_vm1, %v325_v14  ;;  %1765 = vmatprep.mubr.msk.f32.mxu1 %vm2204_vm0, %v2205_v1  ;;  %p2123_p9 = pneg %p2122_p7 }
  0xa7   : > { %1760 = vmatprep.mubr.msk.f32.mxu0 %vm2204_vm0, %v2205_v1  ;;  %1845 = vmatpush3.bf16.msra.mxu0 %v1844_v18 }
  0xa8   : > { %1846 = vmatprep.subr.bf16.mxu0 %v2203_v0 }
  0xab   : > { %1848 = vmatpush3.bf16.msra.mxu0 %v1847_v20 }
  0xac   : > { %1785 = vmatprep.subr.mxu0 %v2205_v1 }
  0xae   : > { %1761 = vmatmul.mubr.msk.f32.vlgmr.msra.gmra.mrb[2].mxu0 %vm330_vm1, %v325_v14 }
  0xaf   : > { %1787 = vmatprep.mubr.msk.f32.mxu0 %vm2204_vm0, %v2205_v1 }
 0x178   : > { %v474_v21 = vpop.f32.mrb[0].mxu1 }
 0x179   : > { %799 = vrot.lane.b32.xlu1 %v474_v21, %s2206_s28  ;;  %v1751_v22 = vpop.f32.mrb[1].mxu1  ;;  %1764 = vmatpush3.xpose.msk.msra.mxu1 %vm559_vm2, %v474_v21  ;;  %v400_v23 = vpop.f32.mrb[0].mxu0 }
 0x17a   : > { %v1740_v24 = vpop.f32.mrb[1].mxu0  ;;  %1768 = vmatprep.subr.mxu1 %v2205_v1 }
 0x17c   : > { %1766 = vmatmul.mubr.msk.f32.vlgmr.msra.gmra.mrb[2].mxu1 %vm559_vm2, %v400_v23 }
 0x17d   : > { %797 = vrot.lane.b32.xlu1 %v400_v23, %s2206_s28  ;;  %1770 = vmatprep.mubr.msk.f32.mxu1 %vm2204_vm0, %v2205_v1 }
 0x181   : > { %1040 = vrot.lane.b32.xlu1 %v400_v23, %s2207_s19  ;;  %v2523_v28 = vpop.f32.mrb[2].mxu0 }
 0x182   : > { %v1762_v29 = vpop.f32.mrb[3].mxu0  ;;  %1769 = vmatpush3.msra.mxu1 %v2523_v28 }
 0x183   : > { %1849 = vmatprep.subr.bf16.mxu1 %v2203_v0 }
 0x1eb   : > { %v800_v39 = vpop.permute.xlu1 %799 }
 0x1ef   : > { %v798_v44 = vpop.permute.xlu1 %797 }
 0x1f3   : > { %v1041_v46 = vpop.permute.xlu1 %1040 }
 0x24f   : > { %v632_v25 = vpop.f32.mrb[2].mxu1 }
 0x250   : > { %v1767_v26 = vpop.f32.mrb[3].mxu1  ;;  %v637_v27 = vsel %vm636_vm3, %v632_v25, -inf }
 0x251   : > { %638 = vmax.xlane.f32.xlu0 %v637_v27 }
 0x2de   : > { %v639_v30 = vpop.xlane.xlu0 %638 }
 0x2df   : > { %v640_v31 = vsub.f32 %v632_v25, %v639_v30 }
 0x2e1   : > { %v641_v32 = vmul.f32 1.442695, %v640_v31 }
 0x2e3   : > { %1962 = vpow2.f32 %v641_v32 }
 0x2ed   : > { %v1963_v33 = vpop.eup %1962 }
 0x2ee   : > { %1771 = vmatmul.mubr.msk.f32.vlgmr.msra.gmra.mrb[4].mxu1 %vm636_vm3, %v1963_v33  ;;  %v643_v34 = vsel %vm636_vm3, %v1963_v33, 0.0  ;;  %v1449_v33 = vld [vmem:[#allocation10 + $0x38] sm:$0xff] }
 0x2ef   : > { %644 = vadd.xlane.f32.xlu0 %v643_v34  ;;  %1777 = vmatprep.mubr.msk.f32.mxu1 %vm2204_vm0, %v2205_v1 }
 0x2f0   : > { %1851 = vmatpush3.bf16.msra.mxu1 %v1850_v37 }
 0x2f1   : > { %1780 = vmatprep.subr.mxu1 %v2205_v1 }
 0x305   : > { %1042 = vrot.lane.b32.xlu0 %v474_v21, %s2207_s19 }
 0x309   : > { %1127 = vrot.lane.b32.xlu0 %v2523_v28, %s2207_s19 }
 0x30d   : > { %1284 = vrot.lane.b32.xlu0 %v474_v21, %s2208_s12 }
 0x311   : > { %1282 = vrot.lane.b32.xlu0 %v400_v23, %s2208_s12 }
 0x37c   : > { %v645_v38 = vpop.xlane.xlu0 %644 }
 0x37d   : > { %1964 = vrcp.f32 %v645_v38 }
 0x380   : > { %v1043_v45 = vpop.permute.xlu0 %1042 }
 0x384   : > { %v1128_v47 = vpop.permute.xlu0 %1127 }
 0x387   : > { %v1965_v40 = vpop.eup %1964 }
 0x388   : > { %v1285_v56 = vpop.permute.xlu0 %1284 }
 0x38c   : > { %v1283_v57 = vpop.permute.xlu0 %1282 }
 0x3c1   : > { %v715_v41 = vpop.f32.mrb[4].mxu1 }
 0x3c2   : > { %v720_v42 = vmul.f32 %v1965_v40, %v715_v41  ;;  %v1772_v43 = vpop.f32.mrb[5].mxu1 }
 0x3c4   : > { %1778 = vmatmul.mubr.msk.f32.vlgmr.msra.gmra.mrb[6].mxu1 %vm559_vm2, %v720_v42 }
 0x3c5   : > { %1781 = vmatpush3.xpose.msk.msra.mxu1 %vm559_vm2, %v800_v39  ;;  %1782 = vmatprep.mubr.msk.f32.mxu1 %vm2204_vm0, %v2205_v1  ;;  %v1666_v39 = vld [vmem:[%s2642_s5] ss:$0 sm:$0xff] }
 0x3c6   : > { %1797 = vmatprep.subr.mxu1 %v2205_v1 }
 0x3c8   : > { %1783 = vmatmul.mubr.msk.f32.vlgmr.msra.gmra.mrb[8].mxu1 %vm559_vm2, %v798_v44 }
 0x3c9   : > { %1798 = vmatpush3.xpose.msk.msra.mxu1 %vm559_vm2, %v1043_v45  ;;  %1799 = vmatprep.mubr.msk.f32.mxu1 %vm2204_vm0, %v2205_v1 }
 0x3ca   : > { %1802 = vmatprep.subr.mxu1 %v2205_v1 }
 0x3cc   : > { %1800 = vmatmul.mubr.msk.f32.vlgmr.msra.gmra.mrb[10].mxu1 %vm559_vm2, %v1041_v46 }
 0x3cd   : > { %1803 = vmatpush3.msra.mxu1 %v1128_v47  ;;  %1804 = vmatprep.mubr.msk.f32.mxu1 %vm2204_vm0, %v2205_v1 }
 0x3ce   : > { %1814 = vmatprep.subr.mxu1 %v2205_v1 }
 0x497   : > { %v2549_v48 = vpop.f32.mrb[6].mxu1 }
 0x498   : > { %v1779_v49 = vpop.f32.mrb[7].mxu1 }
 0x49b   : > { %v871_v50 = vpop.f32.mrb[8].mxu1 }
 0x49c   : > { %v1784_v51 = vpop.f32.mrb[9].mxu1  ;;  %v875_v52 = vsel %vm636_vm3, %v871_v50, -inf }
 0x49d   : > { %876 = vmax.xlane.f32.xlu0 %v875_v52 }
 0x49f   : > { %v1114_v53 = vpop.f32.mrb[10].mxu1 }
 0x4a0   : > { %v1801_v54 = vpop.f32.mrb[11].mxu1  ;;  %v1118_v55 = vsel %vm636_vm3, %v1114_v53, -inf }
 0x4a1   : > { %1119 = vmax.xlane.f32.xlu1 %v1118_v55 }
 0x4b2   : > { %885 = vrot.lane.b32.xlu1 %v2523_v28, %s2206_s28  ;;  %s2126_s28 = scalar_lea.vmem %s2125_s18, 256 }
 0x4b3   : > { %p2128_p3 = scmp.lt.s32.totalorder %s2126_s28, %s2120_s8 }
 0x4b5   : > { %p2129_p13 = por %p2128_p3, %p2127_p12 }
 0x4b7   : > { %p2130_p0 = pnand %p2129_p13, %p2123_p9 }
 0x52a   : > { %v877_v58 = vpop.xlane.xlu0 %876 }
 0x52b   : > { %v878_v59 = vsub.f32 %v871_v50, %v877_v58 }
 0x52d   : > { %v879_v60 = vmul.f32 1.442695, %v878_v59 }
 0x52e   : > { %v1120_v61 = vpop.xlane.xlu1 %1119 }
 0x52f   : > { %1966 = vpow2.f32 %v879_v60  ;;  %v1121_v62 = vsub.f32 %v1114_v53, %v1120_v61 }
 0x531   : > { %v1122_v63 = vmul.f32 1.442695, %v1121_v62 }
 0x532   : > { %v886_v2 = vpop.permute.xlu1 %885 }
 0x533   : > { %1968 = vpow2.f32 %v1122_v63  ;;  %1786 = vmatpush3.msra.mxu0 %v886_v2 }
 0x534   : > { %1852 = vmatprep.subr.bf16.mxu0 %v2203_v0 }
 0x539   : > { %v1967_v3 = vpop.eup %1966 }
 0x53a   : > { %1788 = vmatmul.mubr.msk.f32.vlgmr.msra.gmra.mrb[4].mxu0 %vm636_vm3, %v1967_v3  ;;  %v881_v4 = vsel %vm636_vm3, %v1967_v3, 0.0 }
 0x53b   : > { %882 = vadd.xlane.f32.xlu1 %v881_v4  ;;  %1794 = vmatprep.mubr.msk.f32.mxu0 %vm2204_vm0, %v2205_v1 }
 0x53c   : > { %1854 = vmatpush3.bf16.msra.mxu0 %v1853_v9 }
 0x53d   : > { %v1969_v5 = vpop.eup %1968  ;;  %1855 = vmatprep.subr.bf16.mxu0 %v2203_v0 }
 0x53e   : > { %1805 = vmatmul.mubr.msk.f32.vlgmr.msra.gmra.mrb[12].mxu1 %vm636_vm3, %v1969_v5  ;;  %v1124_v6 = vsel %vm636_vm3, %v1969_v5, 0.0 }
 0x53f   : > { %1815 = vmatpush3.xpose.msk.msra.mxu1 %vm559_vm2, %v1285_v56  ;;  %1125 = vadd.xlane.f32.xlu0 %v1124_v6 }
 0x540   : > { %1816 = vmatprep.mubr.msk.f32.mxu1 %vm2204_vm0, %v2205_v1 }
 0x542   : > { %1817 = vmatmul.mubr.msk.f32.vlgmr.msra.gmra.mrb[14].mxu1 %vm559_vm2, %v1283_v57 }
 0x5c8   : > { %v883_v10 = vpop.xlane.xlu1 %882 }
 0x5c9   : > { %1970 = vrcp.f32 %v883_v10 }
 0x5cc   : > { %v1126_v11 = vpop.xlane.xlu0 %1125 }
 0x5cd   : > { %1972 = vrcp.f32 %v1126_v11 }
 0x5d3   : > { %v1971_v14 = vpop.eup %1970 }
 0x5d7   : > { %v1973_v21 = vpop.eup %1972 }
 0x60d   : > { %v957_v15 = vpop.f32.mrb[4].mxu0 }
 0x60e   : > { %v962_v17 = vmul.f32 %v1971_v14, %v957_v15  ;;  %v1789_v18 = vpop.f32.mrb[5].mxu0 }
 0x610   : > { %1795 = vmatmul.mubr.msk.f32.vlgmr.msra.gmra.mrb[6].mxu0 %vm559_vm2, %v962_v17 }
 0x611   : > { %v1199_v19 = vpop.f32.mrb[12].mxu1  ;;  %1857 = vmatpush3.bf16.msra.mxu0 %v1856_v16  ;;  %1811 = vmatprep.mubr.msk.f32.mxu0 %vm2204_vm0, %v2205_v1 }
 0x612   : > { %v1806_v20 = vpop.f32.mrb[13].mxu1  ;;  %1819 = vmatprep.subr.mxu0 %v2205_v1  ;;  %v1204_v23 = vmul.f32 %v1973_v21, %v1199_v19 }
 0x615   : > { %v1356_v22 = vpop.f32.mrb[14].mxu1 }
 0x616   : > { %v1818_v24 = vpop.f32.mrb[15].mxu1  ;;  %v1360_v25 = vsel %vm636_vm3, %v1356_v22, -inf }
 0x617   : > { %1361 = vmax.xlane.f32.xlu0 %v1360_v25 }
 0x618   : > { %1812 = vmatmul.mubr.msk.f32.vlgmr.msra.gmra.mrb[6].mxu0 %vm559_vm2, %v1204_v23 }
 0x619   : > { %1821 = vmatprep.mubr.msk.f32.mxu0 %vm2204_vm0, %v2205_v1 }
 0x62d   : > { %1369 = vrot.lane.b32.xlu0 %v2523_v28, %s2208_s12  ;;  %v1448_v28 = vld [vmem:[#allocation10 + $0x30] sm:$0xff] }
 0x62e   : > { %v1859_v34 = vpack.c.bf16 %v1449_v33, %v1448_v28 }
 0x6a4   : > { %v1362_v26 = vpop.xlane.xlu0 %1361 }
 0x6a5   : > { %v1363_v27 = vsub.f32 %v1356_v22, %v1362_v26 }
 0x6a7   : > { %v1364_v29 = vmul.f32 1.442695, %v1363_v27 }
 0x6a8   : > { %v1370_v30 = vpop.permute.xlu0 %1369 }
 0x6a9   : > { %1974 = vpow2.f32 %v1364_v29  ;;  %1820 = vmatpush3.msra.mxu0 %v1370_v30 }
 0x6aa   : > { %1858 = vmatprep.subr.bf16.mxu0 %v2203_v0 }
 0x6b3   : > { %v1975_v31 = vpop.eup %1974 }
 0x6b4   : > { %1822 = vmatmul.mubr.msk.f32.vlgmr.msra.gmra.mrb[8].mxu0 %vm636_vm3, %v1975_v31  ;;  %v1366_v32 = vsel %vm636_vm3, %v1975_v31, 0.0 }
 0x6b5   : > { %1367 = vadd.xlane.f32.xlu1 %v1366_v32  ;;  %1828 = vmatprep.mubr.msk.f32.mxu0 %vm2204_vm0, %v2205_v1  ;;  %v796_v1 = vadd.f32 %v1666_v39, %v2549_v48 }
 0x6b6   : > { %1860 = vmatpush3.bf16.msra.mxu0 %v1859_v34 }
 0x742   : > { %v1368_v35 = vpop.xlane.xlu1 %1367 }
 0x743   : > { %1976 = vrcp.f32 %v1368_v35 }
 0x74d   : > { %v1977_v36 = vpop.eup %1976 }
 0x787   : > { %v1441_v0 = vpop.f32.mrb[8].mxu0 }
 0x788   : > { %v1446_v37 = vmul.f32 %v1977_v36, %v1441_v0  ;;  %v1823_v38 = vpop.f32.mrb[9].mxu0 }
 0x78a   : > { %1829 = vmatmul.mubr.msk.f32.vlgmr.msra.gmra.mrb[6].mxu0 %vm559_vm2, %v1446_v37 }
 0x85d   : > { %v1519_v40 = vpop.f32.mrb[6].mxu0 }
 0x85e   : > { %v1862_v41 = vadd.f32 %v1519_v40, %v796_v1  ;;  %v1830_v42 = vpop.f32.mrb[7].mxu0 }
 0x860   : > { %1524 = vst [vmem:[%s324_s10] sm:$0xff] %v1862_v41 }
 0x861   : > { %2133 = shalt.err (!%p2130_p0)
}
 0x862   : > { %s2134_s14 = scalar_lea.hbm %s2593_s16, 128  ;;  %s2138_s13 = scalar_lea.hbm %s2643_s6, 256 }
 0x863   : > { %p2135_p2 = scmp.ne.s32.totalorder %s2593_s16, %s2134_s14  ;;  %p2139_p10 = scmp.lt.u32.totalorder %s2593_s16, %s2643_s6 }
 0x864   : > { %p2140_p11 = scmp.lt.u32.totalorder %s2138_s13, %s2134_s14  ;;  %p2142_p6 = scmp.lt.u32.totalorder %s2134_s14, %s2593_s16 }
 0x865   : > { %p2136_p8 = pnand %p2135_p2, %p2661_p5 }
 0x866   : > { %p2141_p1 = por %p2140_p11, %p2139_p10 }
 0x867   : > { %p2137_p4 = pneg %p2136_p8 }
 0x868   : > { %p2143_p7 = por %p2142_p6, %p2141_p1 }
 0x86a   : > { %p2144_p9 = pnand %p2143_p7, %p2137_p4 }
 0x86c   : > { %2147 = shalt.err (!%p2144_p9)
}
 0x86d   : > { %1885 = dma.vmem_to_hbm [thread:$0]  (%p2661_p5), %s2595_s20, 128, %s2593_s16, %s1526_s27  }
 0x86e PF: > { %s1551_s10 = sand.u32 1, %s2182_s21   ;;  %p2662_p12 = scmp.ne.s32.totalorder %s2654_s25, 0 }
 0x86f   : > { %p2663_p3 = scmp.ge.s32.totalorder %s2194_s24, 2  ;;  %s1552_s11 = scalar_lea.sflag [#allocation4], %s1551_s10 }
 0x871   : > { %p1905_p13 = pnand %p2663_p3, %p2662_p12 }
 0x873   : > { %2177 = dma.done.wait (!%p1905_p13), %s1552_s11, 128  }
 0x874   : > { %2179 = vsyncadd (!%p1905_p13), %s1552_s11, 4294967168  ;;  %p21_p0 = scmp.ge.s32.totalorder %s2397_s15, 4   ;;  %s2664_s21 = smov %s2186_s22 }
 0x875   : > { %s2665_s22 = smov %s2190_s23  ;;  %s2666_s23 = smov %s2408_s26 }
 0x876   : > { %s2667_s24 = smov %s2397_s15  ;;  %23 = sbr.rel (!%p21_p0) target bundleno = 7 (0x7), region = 108 }
 0x87d   :  { %1557 = vsyncpa [#allocation3], 1 }
 0x87e   :  { %1559 = vsyncpa [#allocation3 + $0x1], 1 }
 0x87f   :  { %1560 = vsyncpa [#allocation6], 1 }
 0x880   :  { %1561 = vsyncpa [#allocation9], 1 }
 0x881   :  { %1562 = vsyncpa [#allocation4], 1 }
 0x882   :  { %1564 = vsyncpa [#allocation4 + $0x1], 1 }

</bundles_post_ra>
